<compile_context>
chip_gen: v7x
topology: tpu7x:2x2x1
jax: 0.10.0
libtpu: 0.0.40
codegen_flags: <defaults>
</compile_context>

<pallas_src>
import functools

import jax
import jax.numpy as jnp
from jax.experimental import pallas as pl
from jax.experimental.pallas import tpu as pltpu


def value_net_kernel(xT_ref,
                     w1_ref, b1_ref,
                     w2_ref, b2_ref,
                     w3_ref, b3_ref,
                     w4_ref, b4_ref,
                     out_ref,
                     *, matmul_dtype):
    """One batch tile. Activations are feature-major: (features, TILE_B)."""
    cast = lambda a: a.astype(matmul_dtype)

    xT = xT_ref[...]                                              # (S, TILE_B)
    h = jnp.tanh(jnp.dot(cast(w1_ref[...]), cast(xT),
                         preferred_element_type=jnp.float32) + b1_ref[...])
    h = jnp.tanh(jnp.dot(cast(w2_ref[...]), cast(h),
                         preferred_element_type=jnp.float32) + b2_ref[...])
    h = jnp.tanh(jnp.dot(cast(w3_ref[...]), cast(h),
                         preferred_element_type=jnp.float32) + b3_ref[...])
    # fc4: N=1 head done on the VPU (multiply) + XLU (sublane reduce); the
    # result is naturally a lane-dense (1, TILE_B) row.
    v = jnp.sum(w4_ref[...] * h, axis=0, keepdims=True) + b4_ref[...]
    out_ref[...] = v.astype(out_ref.dtype)                        # (1, TILE_B)


def value_net_forward(x, params, *, tile_b=512, matmul_dtype=jnp.float32):
    """x: (B, state_dim) f32. params: PyTorch-layout weights (out,in), biases (out,)."""
    B, state_dim = x.shape
    hidden = params["w1"].shape[0]

    # Lane-dense batch tile: multiple of 128, capped at tile_b (512 default,
    # well inside v7x's 64 MiB VMEM with double buffering).
    tb = max(128, min(tile_b, ((B + 127) // 128) * 128))
    num_tiles = pl.cdiv(B, tb)
    b_pad = num_tiles * tb

    # Feature-major input, zero-padded along the batch (lane) axis.
    xT = jnp.zeros((state_dim, b_pad), x.dtype).at[:, :B].set(x.T)

    # Kernel-layout params: weights stay (out, in); biases become columns.
    w1, w2, w3 = params["w1"], params["w2"], params["w3"]
    b1 = params["b1"].reshape(hidden, 1)
    b2 = params["b2"].reshape(hidden, 1)
    b3 = params["b3"].reshape(hidden, 1)
    w4 = params["w4"].reshape(1, hidden).T          # (hidden, 1) column
    b4 = params["b4"].reshape(1, 1)

    const = lambda shape: pl.BlockSpec(shape, lambda i: (0, 0))

    n_params = (state_dim * hidden + hidden
                + 2 * (hidden * hidden + hidden)
                + hidden + 1)
    cost = pl.CostEstimate(
        flops=2 * b_pad * (state_dim * hidden + 2 * hidden * hidden + hidden),
        transcendentals=3 * b_pad * hidden,
        bytes_accessed=4 * (state_dim * b_pad + b_pad + n_params),
    )

    out = pl.pallas_call(
        functools.partial(value_net_kernel, matmul_dtype=matmul_dtype),
        out_shape=jax.ShapeDtypeStruct((1, b_pad), jnp.float32),
        grid_spec=pltpu.PrefetchScalarGridSpec(
            num_scalar_prefetch=0,
            grid=(num_tiles,),
            in_specs=[
                pl.BlockSpec((state_dim, tb), lambda i: (0, i)),   # x stream
                const((hidden, state_dim)), const((hidden, 1)),    # fc1
                const((hidden, hidden)),    const((hidden, 1)),    # fc2
                const((hidden, hidden)),    const((hidden, 1)),    # fc3
                const((hidden, 1)),         const((1, 1)),         # fc4
            ],
            out_specs=pl.BlockSpec((1, tb), lambda i: (0, i)),
        ),
        compiler_params=pltpu.CompilerParams(
            dimension_semantics=("parallel",),        # megacore sharding (v7x)
            vmem_limit_bytes=32 * 1024 * 1024,
        ),
        cost_estimate=cost,
    )(xT, w1, b1, w2, b2, w3, b3, w4, b4)

    return out[0, :B].reshape(B, 1)


def init_params(key, state_dim, hidden=20):
    """PyTorch nn.Linear-style init: uniform ±1/sqrt(fan_in); W is (out, in), b is (out,)."""
    dims = [(state_dim, hidden), (hidden, hidden), (hidden, hidden), (hidden, 1)]
    params = {}
    for i, (fan_in, fan_out) in enumerate(dims, start=1):
        key, kw, kb = jax.random.split(key, 3)
        bound = 1.0 / jnp.sqrt(jnp.float32(fan_in))
        params[f"w{i}"] = jax.random.uniform(
            kw, (fan_out, fan_in), jnp.float32, -bound, bound)
        params[f"b{i}"] = jax.random.uniform(
            kb, (fan_out,), jnp.float32, -bound, bound)
    return params


def reference_forward(x, params):
    h = jnp.tanh(x @ params["w1"].T + params["b1"])
    h = jnp.tanh(h @ params["w2"].T + params["b2"])
    h = jnp.tanh(h @ params["w3"].T + params["b3"])
    return h @ params["w4"].T + params["b4"]


if __name__ == "__main__":
    key = jax.random.PRNGKey(0)
    state_dim = 8       # small state dimension
    action_dim = 2      # unused by forward (as in the PyTorch module)
    hidden = 20         # module hardcodes hidden=20 regardless of ctor arg
    batch = 4

    key, kx, kp = jax.random.split(key, 3)
    x = jax.random.normal(kx, (batch, state_dim), dtype=jnp.float32)
    params = init_params(kp, state_dim, hidden)

    ref = reference_forward(x, params)

    # Exact (f32) path — must match the JAX reference tightly.
    v32 = jax.block_until_ready(
        value_net_forward(x, params, matmul_dtype=jnp.float32))
    assert v32.shape == (batch, 1)
    assert jnp.allclose(v32, ref, atol=1e-5, rtol=1e-5), "f32 mismatch vs reference"

    # bf16 matmul-operand path (MXU-friendly on v6e/v7x; operands-only per v5e
    # guidance, accumulation / bias / tanh stay f32).
    vbf = jax.block_until_ready(
        value_net_forward(x, params, matmul_dtype=jnp.bfloat16))
    assert vbf.shape == (batch, 1)
    assert jnp.allclose(vbf, ref, atol=5e-2, rtol=5e-2), "bf16 mismatch vs reference"

    print("KERNEL_OK")
</pallas_src>

<mosaic_0001>
module attributes {stable_mosaic.version = 11 : i64} {
  func.func @value_net_kernel(%arg0: i32, %arg1: memref<8x128xf32, #tpu.memory_space<vmem>>, %arg2: memref<20x8xf32, #tpu.memory_space<vmem>>, %arg3: memref<20x1xf32, #tpu.memory_space<vmem>>, %arg4: memref<20x20xf32, #tpu.memory_space<vmem>>, %arg5: memref<20x1xf32, #tpu.memory_space<vmem>>, %arg6: memref<20x20xf32, #tpu.memory_space<vmem>>, %arg7: memref<20x1xf32, #tpu.memory_space<vmem>>, %arg8: memref<20x1xf32, #tpu.memory_space<vmem>>, %arg9: memref<1x1xf32, #tpu.memory_space<vmem>>, %arg10: memref<1x128xf32, #tpu.memory_space<vmem>>) attributes {dimension_semantics = [#tpu.dimension_semantics<parallel>], iteration_bounds = array<i64: 1>, scalar_prefetch = 0 : i64, scratch_operands = 0 : i64, tpu.core_type = #tpu.core_type<tc>, window_params = [{transform_indices = @transform_0, window_bounds = array<i64: 8, 128>}, {pipeline_mode = #tpu.pipeline_mode<synchronous>, transform_indices = @transform_1, window_bounds = array<i64: 20, 8>}, {pipeline_mode = #tpu.pipeline_mode<synchronous>, transform_indices = @transform_2, window_bounds = array<i64: 20, 1>}, {pipeline_mode = #tpu.pipeline_mode<synchronous>, transform_indices = @transform_3, window_bounds = array<i64: 20, 20>}, {pipeline_mode = #tpu.pipeline_mode<synchronous>, transform_indices = @transform_4, window_bounds = array<i64: 20, 1>}, {pipeline_mode = #tpu.pipeline_mode<synchronous>, transform_indices = @transform_5, window_bounds = array<i64: 20, 20>}, {pipeline_mode = #tpu.pipeline_mode<synchronous>, transform_indices = @transform_6, window_bounds = array<i64: 20, 1>}, {pipeline_mode = #tpu.pipeline_mode<synchronous>, transform_indices = @transform_7, window_bounds = array<i64: 20, 1>}, {pipeline_mode = #tpu.pipeline_mode<synchronous>, transform_indices = @transform_8, window_bounds = array<i64: 1, 1>}, {transform_indices = @transform_9, window_bounds = array<i64: 1, 128>}]} {
    %c0 = arith.constant 0 : index
    %c0_0 = arith.constant 0 : index
    %0 = vector.load %arg1[%c0, %c0_0] : memref<8x128xf32, #tpu.memory_space<vmem>>, vector<8x128xf32>
    %c0_1 = arith.constant 0 : index
    %c0_2 = arith.constant 0 : index
    %1 = vector.load %arg2[%c0_1, %c0_2] : memref<20x8xf32, #tpu.memory_space<vmem>>, vector<20x8xf32>
    %cst = arith.constant dense<0.000000e+00> : vector<20x128xf32>
    %2 = tpu.matmul %1, %0, %cst {dimension_numbers = #tpu.dot_dimension_numbers<[1], [0], [0], [1], [0, 0, 1, 1], [], []>} : vector<20x8xf32>, vector<8x128xf32>, vector<20x128xf32> -> vector<20x128xf32>
    %c0_3 = arith.constant 0 : index
    %c0_4 = arith.constant 0 : index
    %3 = vector.load %arg3[%c0_3, %c0_4] : memref<20x1xf32, #tpu.memory_space<vmem>>, vector<20x1xf32>
    %4 = vector.broadcast %3 : vector<20x1xf32> to vector<20x128xf32>
    %5 = arith.addf %2, %4 : vector<20x128xf32>
    %6 = math.tanh %5 : vector<20x128xf32>
    %c0_5 = arith.constant 0 : index
    %c0_6 = arith.constant 0 : index
    %7 = vector.load %arg4[%c0_5, %c0_6] : memref<20x20xf32, #tpu.memory_space<vmem>>, vector<20x20xf32>
    %cst_7 = arith.constant dense<0.000000e+00> : vector<20x128xf32>
    %8 = tpu.matmul %7, %6, %cst_7 {dimension_numbers = #tpu.dot_dimension_numbers<[1], [0], [0], [1], [0, 0, 1, 1], [], []>} : vector<20x20xf32>, vector<20x128xf32>, vector<20x128xf32> -> vector<20x128xf32>
    %c0_8 = arith.constant 0 : index
    %c0_9 = arith.constant 0 : index
    %9 = vector.load %arg5[%c0_8, %c0_9] : memref<20x1xf32, #tpu.memory_space<vmem>>, vector<20x1xf32>
    %10 = vector.broadcast %9 : vector<20x1xf32> to vector<20x128xf32>
    %11 = arith.addf %8, %10 : vector<20x128xf32>
    %12 = math.tanh %11 : vector<20x128xf32>
    %c0_10 = arith.constant 0 : index
    %c0_11 = arith.constant 0 : index
    %13 = vector.load %arg6[%c0_10, %c0_11] : memref<20x20xf32, #tpu.memory_space<vmem>>, vector<20x20xf32>
    %cst_12 = arith.constant dense<0.000000e+00> : vector<20x128xf32>
    %14 = tpu.matmul %13, %12, %cst_12 {dimension_numbers = #tpu.dot_dimension_numbers<[1], [0], [0], [1], [0, 0, 1, 1], [], []>} : vector<20x20xf32>, vector<20x128xf32>, vector<20x128xf32> -> vector<20x128xf32>
    %c0_13 = arith.constant 0 : index
    %c0_14 = arith.constant 0 : index
    %15 = vector.load %arg7[%c0_13, %c0_14] : memref<20x1xf32, #tpu.memory_space<vmem>>, vector<20x1xf32>
    %16 = vector.broadcast %15 : vector<20x1xf32> to vector<20x128xf32>
    %17 = arith.addf %14, %16 : vector<20x128xf32>
    %18 = math.tanh %17 : vector<20x128xf32>
    %c0_15 = arith.constant 0 : index
    %c0_16 = arith.constant 0 : index
    %19 = vector.load %arg8[%c0_15, %c0_16] : memref<20x1xf32, #tpu.memory_space<vmem>>, vector<20x1xf32>
    %20 = vector.broadcast %19 : vector<20x1xf32> to vector<20x128xf32>
    %21 = arith.mulf %20, %18 : vector<20x128xf32>
    %cst_17 = arith.constant dense<0.000000e+00> : vector<128xf32>
    %22 = vector.multi_reduction <add>, %21, %cst_17 [0] : vector<20x128xf32> to vector<128xf32>
    %23 = vector.shape_cast %22 : vector<128xf32> to vector<1x128xf32>
    %c0_18 = arith.constant 0 : index
    %c0_19 = arith.constant 0 : index
    %24 = vector.load %arg9[%c0_18, %c0_19] : memref<1x1xf32, #tpu.memory_space<vmem>>, vector<1x1xf32>
    %25 = vector.broadcast %24 : vector<1x1xf32> to vector<1x128xf32>
    %26 = arith.addf %23, %25 : vector<1x128xf32>
    %c0_20 = arith.constant 0 : index
    %c0_21 = arith.constant 0 : index
    %27 = vector.load %arg10[%c0_20, %c0_21] : memref<1x128xf32, #tpu.memory_space<vmem>>, vector<1x128xf32>
    tpu.vector_store %arg10[%c0_20, %c0_21], %26 {strides = array<i32>} : memref<1x128xf32, #tpu.memory_space<vmem>>, vector<1x128xf32>,
    return
  }
  func.func @transform_0(%arg0: i32) -> (i32, i32) {
    %c0_i32 = arith.constant 0 : i32
    %c0_i32_0 = arith.constant 0 : i32
    return %c0_i32, %arg0 : i32, i32
  }
  func.func @transform_1(%arg0: i32) -> (i32, i32) {
    %c0_i32 = arith.constant 0 : i32
    %c0_i32_0 = arith.constant 0 : i32
    %c0_i32_1 = arith.constant 0 : i32
    return %c0_i32, %c0_i32_0 : i32, i32
  }
  func.func @transform_2(%arg0: i32) -> (i32, i32) {
    %c0_i32 = arith.constant 0 : i32
    %c0_i32_0 = arith.constant 0 : i32
    %c0_i32_1 = arith.constant 0 : i32
    return %c0_i32, %c0_i32_0 : i32, i32
  }
  func.func @transform_3(%arg0: i32) -> (i32, i32) {
    %c0_i32 = arith.constant 0 : i32
    %c0_i32_0 = arith.constant 0 : i32
    %c0_i32_1 = arith.constant 0 : i32
    return %c0_i32, %c0_i32_0 : i32, i32
  }
  func.func @transform_4(%arg0: i32) -> (i32, i32) {
    %c0_i32 = arith.constant 0 : i32
    %c0_i32_0 = arith.constant 0 : i32
    %c0_i32_1 = arith.constant 0 : i32
    return %c0_i32, %c0_i32_0 : i32, i32
  }
  func.func @transform_5(%arg0: i32) -> (i32, i32) {
    %c0_i32 = arith.constant 0 : i32
    %c0_i32_0 = arith.constant 0 : i32
    %c0_i32_1 = arith.constant 0 : i32
    return %c0_i32, %c0_i32_0 : i32, i32
  }
  func.func @transform_6(%arg0: i32) -> (i32, i32) {
    %c0_i32 = arith.constant 0 : i32
    %c0_i32_0 = arith.constant 0 : i32
    %c0_i32_1 = arith.constant 0 : i32
    return %c0_i32, %c0_i32_0 : i32, i32
  }
  func.func @transform_7(%arg0: i32) -> (i32, i32) {
    %c0_i32 = arith.constant 0 : i32
    %c0_i32_0 = arith.constant 0 : i32
    %c0_i32_1 = arith.constant 0 : i32
    return %c0_i32, %c0_i32_0 : i32, i32
  }
  func.func @transform_8(%arg0: i32) -> (i32, i32) {
    %c0_i32 = arith.constant 0 : i32
    %c0_i32_0 = arith.constant 0 : i32
    %c0_i32_1 = arith.constant 0 : i32
    return %c0_i32, %c0_i32_0 : i32, i32
  }
  func.func @transform_9(%arg0: i32) -> (i32, i32) {
    %c0_i32 = arith.constant 0 : i32
    %c0_i32_0 = arith.constant 0 : i32
    return %c0_i32, %arg0 : i32, i32
  }
}

</mosaic_0001>

<bundles_post_ra>
// kernel: tpu_custom_call.1
= control target key start
LH: loop header
LB: loop body
LE: loop exit
PB: predicated region body
PF: predicated region fallthrough
CT: control target
= control target key end

     0   :  { %s735_s0 = inlined_call_operand.vmem [shape: f32[8,128], index: 0, kind: input, shape index: {}]   ;;  %s736_s1 = inlined_call_operand.vmem [shape: f32[20,8], index: 1, kind: input, shape index: {}]   ;;  %s737_s2 = inlined_call_operand.vmem [shape: f32[20,1], index: 2, kind: input, shape index: {}]   ;;  %s738_s3 = inlined_call_operand.vmem [shape: f32[20,20], index: 3, kind: input, shape index: {}]   ;;  %s739_s4 = inlined_call_operand.vmem [shape: f32[20,1], index: 4, kind: input, shape index: {}]   ;;  %s740_s5 = inlined_call_operand.vmem [shape: f32[20,20], index: 5, kind: input, shape index: {}]   ;;  %s741_s6 = inlined_call_operand.vmem [shape: f32[20,1], index: 6, kind: input, shape index: {}]   ;;  %s742_s7 = inlined_call_operand.vmem [shape: f32[20,1], index: 7, kind: input, shape index: {}]   ;;  %s743_s8 = inlined_call_operand.<no memory space> [shape: f32[1,1], index: 8, kind: input, shape index: {}]   ;;  %s744_s9 = inlined_call_operand.hbm [shape: f32[1,128], index: 9, kind: output, shape index: {}]  }
   0x1   :  { %v14_v0 = vstv %s743_s8 }
   0x2   :  { %15 = vst [vmem:[#allocation2] sm:$0x1] %v14_v0 }
   0x3   :  { %v35_v1 = vld [vmem:[%s735_s0] sm:$0xff]  ;;  %vm57_vm0 = vcmask 64512   ;;  %v565_v3 = vmov 0.0   ;;  %vm566_vm1 = vmmov 0   ;;  %v38_v4 = vld [vmem:[%s736_s1 + $0x10] sm:$0xf] }
   0x4   :  { %v36_v2 = vld [vmem:[%s736_s1] sm:$0xff]  ;;  %467 = vmatprep.subr.mxu0 %v565_v3  ;;  %469 = vmatprep.mubr.msk.f32.mxu0 %vm566_vm1, %v565_v3  ;;  %v37_v6 = vld [vmem:[%s736_s1 + $0x8] sm:$0xff]  ;;  %v41_v7 = vld [vmem:[%s737_s2 + $0x10] sm:$0xf]  ;;  %v567_v8 = vmov 0  }
   0x5   :  { %468 = vmatpush3.msra.mxu0 %v35_v1  ;;  %514 = vmatprep.subr.mxu1 %v565_v3  ;;  %v39_v5 = vld [vmem:[%s737_s2] sm:$0xff] }
   0x6   :  { %470 = vmatmul.mubr.msk.f32.vlgmr.msra.gmra.mrb[0].mxu0 %vm57_vm0, %v36_v2  ;;  %515 = vmatpush3.msra.mxu1 %v35_v1 }
   0x7   :  { %472 = vmatprep.mubr.msk.f32.mxu0 %vm566_vm1, %v565_v3  ;;  %475 = vmatprep.mubr.msk.f32.mxu1 %vm566_vm1, %v565_v3 }
   0x8   :  { %476 = vmatmul.mubr.msk.f32.vlgmr.msra.gmra.mrb[0].mxu1 %vm57_vm0, %v38_v4  ;;  %521 = vset.pattern.permute.xlu0 %v567_v8 }
   0x9   :  { %16 = vsyncpa [#allocation4], 0  ;;  %44 = vperm.xlu0 %521, %v39_v5   ;;  %522 = vset.pattern.permute.xlu1 %v567_v8  ;;  %v40_v9 = vld [vmem:[%s737_s2 + $0x8] sm:$0xff]  ;;  %v153_v10 = vld [vmem:[%s739_s4] sm:$0xff]  ;;  %v568_v20 = vmov 0.0|0.0   ;;  %vm181_vm2 = vcmask 1043456  }
   0xa   :  { %473 = vmatmul.mubr.msk.f32.gmra.mrb[2].mxu0 %vm57_vm0, %v37_v6  ;;  %54 = vperm.xlu1 %522, %v41_v7   ;;  %v154_v11 = vld [vmem:[%s739_s4 + $0x8] sm:$0xff]  ;;  %v155_v12 = vld [vmem:[%s739_s4 + $0x10] sm:$0xf]  ;;  %v271_v13 = vld [vmem:[%s741_s6] sm:$0xff]  ;;  %vm171_vm3 = vcmask 162816  }
   0xb   :  { %484 = vmatprep.mubr.msk.f32.mxu1 %vm566_vm1, %v565_v3  ;;  %499 = vmatprep.mubr.msk.f32.mxu0 %vm566_vm1, %v565_v3  ;;  %v272_v14 = vld [vmem:[%s741_s6 + $0x8] sm:$0xff]  ;;  %v273_v15 = vld [vmem:[%s741_s6 + $0x10] sm:$0xf]  ;;  %v384_v16 = vld [vmem:[%s742_s7] sm:$0xff] }
   0xc   :  { %v385_v17 = vld [vmem:[%s742_s7 + $0x8] sm:$0xff]  ;;  %v386_v18 = vld [vmem:[%s742_s7 + $0x10] sm:$0xf]  ;;  %v414_v19 = vld [vmem:[#allocation2] sm:$0x1]  ;;  %508 = vmatprep.subr.bf16.mxu1 %v568_v20  ;;  %511 = vmatprep.subr.bf16.mxu0 %v568_v20 }
   0xd   :  { %49 = vperm.xlu0 %521, %v40_v9   ;;  %v150_v37 = vld [vmem:[%s738_s3] sm:$0xff]  ;;  %v151_v38 = vld [vmem:[%s738_s3 + $0x8] sm:$0xff]  ;;  %v152_v39 = vld [vmem:[%s738_s3 + $0x10] sm:$0xf] }
   0xe   :  { %158 = vperm.xlu1 %522, %v153_v10   ;;  %v268_v55 = vld [vmem:[%s740_s5] sm:$0xff]  ;;  %v269_v57 = vld [vmem:[%s740_s5 + $0x8] sm:$0xff]  ;;  %v270_v58 = vld [vmem:[%s740_s5 + $0x10] sm:$0xf]  ;;  %s569_s5 = smov [#allocation3]  }
   0xf   :  { %s432_s23 = sshll.u32 %s569_s5, 4  ;;  %s433_s23 = int_to_ptr.vmem [resolvable:$true] %s432_s23 }
  0x10   :  { %s541_s24 = scalar_lea.vmem %s433_s23, 16  ;;  %s545_s25 = scalar_lea.vmem %s433_s23, 32 }
  0x11   :  { %163 = vperm.xlu0 %521, %v154_v11   ;;  %p542_p0 = scmp.ne.s32.totalorder %s433_s23, %s541_s24  ;;  %p546_p1 = scmp.lt.s32.totalorder %s433_s23, %s433_s23 }
  0x12   :  { %168 = vperm.xlu1 %522, %v155_v12   ;;  %p547_p2 = scmp.lt.s32.totalorder %s545_s25, %s541_s24 }
  0x14   :  { %p548_p3 = por %p547_p2, %p546_p1 }
  0x15   :  { %276 = vperm.xlu0 %521, %v271_v13  }
  0x16   :  { %281 = vperm.xlu1 %522, %v272_v14   ;;  %p549_p4 = pnand %p548_p3, %p542_p0 }
  0x19   :  { %286 = vperm.xlu0 %521, %v273_v15  }
  0x1a   :  { %389 = vperm.xlu1 %522, %v384_v16  }
  0x1d   :  { %394 = vperm.xlu0 %521, %v385_v17  }
  0x1e   :  { %399 = vperm.xlu1 %522, %v386_v18   ;;  %v420_v18 = vlaneseq }
  0x21   :  { %417 = vperm.xlu0 %521, %v414_v19  }
  0x88   :  { %v45_v21 = vpop.permute.xlu0 %44 }
  0x89   :  { %v55_v31 = vpop.permute.xlu1 %54 }
  0x8c   :  { %v50_v27 = vpop.permute.xlu0 %49 }
  0x8d   :  { %v159_v41 = vpop.permute.xlu1 %158 }
  0x90   :  { %v164_v44 = vpop.permute.xlu0 %163 }
  0x91   :  { %v169_v48 = vpop.permute.xlu1 %168 }
  0x94   :  { %v277_v59 = vpop.permute.xlu0 %276 }
  0x95   :  { %v282_v63 = vpop.permute.xlu1 %281 }
  0x98   :  { %v287_v4 = vpop.permute.xlu0 %286 }
  0x99   :  { %v390_v8 = vpop.permute.xlu1 %389 }
  0x9c   :  { %v395_v10 = vpop.permute.xlu0 %394 }
  0x9d   :  { %v400_v15 = vpop.permute.xlu1 %399 }
  0xd9   :  { %v133_v22 = vpop.f32.mrb[0].mxu0 }
  0xda   :  { %v471_v23 = vpop.f32.mrb[1].mxu0  ;;  %v134_v24 = vadd.f32 %v133_v22, %v45_v21  ;;  %v421_v21 = vshrl.u32 %v420_v18, 7 }
  0xdb   :  { %v143_v25 = vpop.f32.mrb[0].mxu1 }
  0xdc   :  { %v477_v26 = vpop.f32.mrb[1].mxu1  ;;  %523 = vtanh.f32 %v134_v24  ;;  %v144_v32 = vadd.f32 %v143_v25, %v55_v31  ;;  %v422_v24 = vsub.s32 0, %v421_v21 }
  0xdd   :  { %v138_v28 = vpop.f32.mrb[2].mxu0  ;;  %v418_v26 = vpop.permute.xlu0 %417 }
  0xde   :  { %v139_v29 = vadd.f32 %v138_v28, %v50_v27  ;;  %v474_v30 = vpop.f32.mrb[3].mxu0  ;;  %v423_v28 = vrot.slane %v418_v26, %v422_v24 }
  0xe0   :  { %525 = vtanh.f32 %v139_v29 }
  0xe1   :  { %527 = vtanh.f32 %v144_v32 }
  0xe6   :  { %v524_v33 = vpop.eup %523 }
  0xea   :  { %v526_v34 = vpop.eup %525 }
  0xeb   :  { %v509_v35 = vpack.c.bf16 %v526_v34, %v524_v33  ;;  %v528_v36 = vpop.eup %527 }
  0xed   :  { %510 = vmatpush3.bf16.msra.mxu1 %v509_v35 }
  0xee   :  { %482 = vmatprep.subr.mxu1 %v565_v3 }
  0xf1   :  { %483 = vmatpush3.msk.msra.mxu1 %vm181_vm2, %v528_v36 }
  0xf2   :  { %485 = vmatmul.mubr.msk.f32.vlgmr.msra.gmra.mrb[2].mxu1 %vm171_vm3, %v150_v37 }
  0xf3   :  { %487 = vmatprep.mubr.msk.f32.mxu1 %vm566_vm1, %v565_v3 }
  0xf6   :  { %488 = vmatmul.mubr.msk.f32.gmra.mrb[4].mxu1 %vm171_vm3, %v151_v38 }
  0xf7   :  { %490 = vmatprep.mubr.msk.f32.mxu1 %vm566_vm1, %v565_v3 }
  0xfa   :  { %491 = vmatmul.mubr.msk.f32.gmra.mrb[6].mxu1 %vm171_vm3, %v152_v39 }
 0x1c5   :  { %v251_v40 = vpop.f32.mrb[2].mxu1 }
 0x1c6   :  { %v486_v42 = vpop.f32.mrb[3].mxu1  ;;  %v252_v43 = vadd.f32 %v251_v40, %v159_v41 }
 0x1c8   :  { %529 = vtanh.f32 %v252_v43 }
 0x1c9   :  { %v256_v45 = vpop.f32.mrb[4].mxu1 }
 0x1ca   :  { %v257_v46 = vadd.f32 %v256_v45, %v164_v44  ;;  %v489_v47 = vpop.f32.mrb[5].mxu1 }
 0x1cc   :  { %531 = vtanh.f32 %v257_v46 }
 0x1cd   :  { %v261_v49 = vpop.f32.mrb[6].mxu1 }
 0x1ce   :  { %v262_v50 = vadd.f32 %v261_v49, %v169_v48  ;;  %v492_v51 = vpop.f32.mrb[7].mxu1 }
 0x1d0   :  { %533 = vtanh.f32 %v262_v50 }
 0x1d2   :  { %v530_v52 = vpop.eup %529 }
 0x1d6   :  { %v532_v53 = vpop.eup %531 }
 0x1d7   :  { %v512_v54 = vpack.c.bf16 %v532_v53, %v530_v52 }
 0x1d9   :  { %513 = vmatpush3.bf16.msra.mxu0 %v512_v54 }
 0x1da   :  { %497 = vmatprep.subr.mxu0 %v565_v3  ;;  %v534_v56 = vpop.eup %533 }
 0x1dd   :  { %498 = vmatpush3.msk.msra.mxu0 %vm181_vm2, %v534_v56 }
 0x1de   :  { %500 = vmatmul.mubr.msk.f32.vlgmr.msra.gmra.mrb[4].mxu0 %vm171_vm3, %v268_v55 }
 0x1df   :  { %502 = vmatprep.mubr.msk.f32.mxu0 %vm566_vm1, %v565_v3 }
 0x1e2   :  { %503 = vmatmul.mubr.msk.f32.gmra.mrb[6].mxu0 %vm171_vm3, %v269_v57 }
 0x1e3   :  { %505 = vmatprep.mubr.msk.f32.mxu0 %vm566_vm1, %v565_v3 }
 0x1e6   :  { %506 = vmatmul.mubr.msk.f32.gmra.mrb[8].mxu0 %vm171_vm3, %v270_v58 }
 0x2b1   :  { %v367_v60 = vpop.f32.mrb[4].mxu0 }
 0x2b2   :  { %v368_v61 = vadd.f32 %v367_v60, %v277_v59  ;;  %v501_v62 = vpop.f32.mrb[5].mxu0 }
 0x2b4   :  { %535 = vtanh.f32 %v368_v61 }
 0x2b5   :  { %v372_v0 = vpop.f32.mrb[6].mxu0 }
 0x2b6   :  { %v373_v1 = vadd.f32 %v372_v0, %v282_v63  ;;  %v504_v2 = vpop.f32.mrb[7].mxu0 }
 0x2b8   :  { %537 = vtanh.f32 %v373_v1 }
 0x2b9   :  { %v377_v5 = vpop.f32.mrb[8].mxu0 }
 0x2ba   :  { %v378_v6 = vadd.f32 %v377_v5, %v287_v4  ;;  %v507_v3 = vpop.f32.mrb[9].mxu0 }
 0x2bc   :  { %539 = vtanh.f32 %v378_v6 }
 0x2be   :  { %v536_v7 = vpop.eup %535 }
 0x2bf   :  { %v402_v11 = vmul.f32 %v536_v7, %v390_v8 }
 0x2c2   :  { %v538_v9 = vpop.eup %537 }
 0x2c3   :  { %v403_v12 = vmul.f32 %v538_v9, %v395_v10 }
 0x2c5   :  { %v405_v13 = vadd.f32 %v403_v12, %v402_v11 }
 0x2c6   :  { %v540_v14 = vpop.eup %539 }
 0x2c7   :  { %v404_v16 = vmul.f32 %v540_v14, %v400_v15 }
 0x2c9   :  { %v406_v17 = vsel %vm181_vm2, %v404_v16, 0.0 }
 0x2ca   :  { %v407_v19 = vadd.f32 %v406_v17, %v405_v13 }
 0x2cc   :  { %v408_v20 = vrot.slane %v407_v19, 4 }
 0x2ce   :  { %v409_v22 = vadd.f32 %v408_v20, %v407_v19 }
 0x2d0   :  { %v410_v23 = vrot.slane %v409_v22, 2 }
 0x2d2   :  { %v411_v25 = vadd.f32 %v410_v23, %v409_v22 }
 0x2d4   :  { %v412_v27 = vrot.slane %v411_v25, 1 }
 0x2d6   :  { %v413_v29 = vadd.f32 %v412_v27, %v411_v25 }
 0x2d8   :  { %v424_v30 = vadd.f32 %v423_v28, %v413_v29 }
 0x2da   :  { %425 = vst [vmem:[#allocation3] sm:$0x1] %v424_v30 }
 0x2db   :  { %552 = shalt.err (!%p549_p4)
}
 0x2dc   :  { %s553_s2 = scalar_lea.hbm %s744_s9, 16 }
 0x2dd   :  { %p554_p5 = scmp.ne.s32.totalorder %s744_s9, %s553_s2  ;;  %p557_p6 = scmp.lt.u32.totalorder %s553_s2, %s744_s9 }
 0x2df   :  { %p559_p7 = pnand %p557_p6, %p554_p5 }
 0x2e1   :  { %562 = shalt.err (!%p559_p7)
}
 0x2e2   :  { %435 = dma.vmem_to_hbm [thread:$0]  %s433_s23, 16, %s744_s9, [#allocation4]  }
 0x2e3   :  { %563 = dma.done.wait [#allocation4], 16  }
 0x2e4   :  { %564 = vsyncadd [#allocation4], 4294967280 }
 0x2e5   :  { %439 = vsyncpa [#allocation4], 1 }

</bundles_post_ra>
